<compile_context>
chip_gen: v5e
topology: v5e:2x2
jax: 0.10.0
libtpu: 0.0.40
codegen_flags: <defaults>
</compile_context>

<pallas_src>
import numpy as np
import jax
import jax.numpy as jnp
from jax.experimental import pallas as pl
from jax.experimental.pallas import tpu as pltpu


def _cross_entropy_kernel(logits_ref, aux_ref, num_ref, den_ref):
    """One batch tile: emit per-tile partial numerator / denominator.

    logits_ref: (TILE_N, C) f32 or bf16
    aux_ref:    (TILE_N, 2) f32 -- [:, 0] = target class index (as float), [:, 1] = w[target]
    num_ref:    (1, 8, 128) f32 -- per-tile sum_i w_i * (logsumexp(x_i) - x_i[t_i]) broadcast
    den_ref:    (1, 8, 128) f32 -- per-tile sum_i w_i broadcast
    """
    x = logits_ref[...].astype(jnp.float32)        # (TILE_N, C), upcast once (bf16 inputs)
    aux = aux_ref[...]                             # (TILE_N, 2) f32
    t = aux[:, 0:1].astype(jnp.int32)              # (TILE_N, 1), exact for C < 2^24
    w = aux[:, 1:2]                                # (TILE_N, 1)

    _, c = x.shape
    col = jax.lax.broadcasted_iota(jnp.int32, (1, c), 1)   # (1, C)
    sel = col == t                                          # (TILE_N, C)

    # Numerically stable logsumexp; xm reused for both exp() and the masked target term.
    m = jnp.max(x, axis=-1, keepdims=True)                              # (TILE_N, 1)
    xm = x - m                                                           # (TILE_N, C)
    sumexp = jnp.sum(jnp.exp(xm), axis=-1, keepdims=True)                # (TILE_N, 1)
    xt_minus_m = jnp.sum(jnp.where(sel, xm, 0.0), axis=-1, keepdims=True)
    per_row = jnp.log(sumexp) - xt_minus_m          # == logsumexp(x) - x[t]

    num = jnp.sum(w * per_row, axis=0, keepdims=True)   # (1, 1)
    den = jnp.sum(w, axis=0, keepdims=True)             # (1, 1)

    num_ref[...] = jnp.broadcast_to(num[None], num_ref.shape)
    den_ref[...] = jnp.broadcast_to(den[None], den_ref.shape)


def _round_up(x, m):
    return ((x + m - 1) // m) * m


def _choose_tile_n(n, c, itemsize, tile_n):
    if tile_n is None:
        budget_per_buf = 4 * 1024 * 1024            # ~4 MiB of logits per pipeline buffer
        tile_n = budget_per_buf // max(1, c * itemsize)
        tile_n = max(8, min(8192, tile_n))
    tile_n = _round_up(max(8, int(tile_n)), 8)
    tile_n = min(tile_n, _round_up(n, 8))
    return int(tile_n)


def _xla_cross_entropy(logits, target, w_t):
    """Pure-XLA fast path for small problems (and the numerical reference)."""
    x = jnp.asarray(logits, jnp.float32)
    lse = jax.nn.logsumexp(x, axis=-1)
    xt = jnp.take_along_axis(x, target[:, None].astype(jnp.int32), axis=-1)[:, 0]
    per_row = lse - xt
    return jnp.sum(w_t * per_row) / jnp.sum(w_t)


def cross_entropy_loss(logits, target, per_cls_weights=None, tile_n=None,
                       force_pallas=False, small_bytes=1 << 20):
    """Pallas equivalent of CrossEntropyLoss.forward.

    logits: (N, C) float array (f32 or bf16)
    target: (N,) integer class indices
    per_cls_weights: optional (C,) float array
    Returns a scalar float32 loss.
    """
    logits = jnp.asarray(logits)
    if logits.dtype not in (jnp.dtype(jnp.float32), jnp.dtype(jnp.bfloat16)):
        logits = logits.astype(jnp.float32)
    n, c = logits.shape
    itemsize = jnp.dtype(logits.dtype).itemsize

    target = jnp.asarray(target, jnp.int32)
    if per_cls_weights is None:
        per_cls_weights = jnp.ones((c,), jnp.float32)
    per_cls_weights = jnp.asarray(per_cls_weights, jnp.float32)

    # Per-row weight gather in the wrapper (O(N), fused by XLA).
    w_t = per_cls_weights[target].astype(jnp.float32)

    # Small-problem fast path: the pallas_call launch + DMA setup dominates tiny shapes.
    if not force_pallas and n * c * itemsize <= small_bytes:
        return _xla_cross_entropy(logits, target, w_t)

    tile_n = _choose_tile_n(n, c, itemsize, tile_n)
    n_pad = _round_up(n, tile_n)
    pad = n_pad - n
    if pad:
        # Padded rows: zero logits (finite lse), target 0 (valid index), zero weight so they
        # contribute nothing to numerator or denominator.
        logits = jnp.pad(logits, ((0, pad), (0, 0)))
        target = jnp.pad(target, (0, pad))
        w_t = jnp.pad(w_t, (0, pad))

    # Pack [target (as f32), w_t] into a single narrow side input -> one DMA stream.
    aux = jnp.stack([target.astype(jnp.float32), w_t], axis=-1)   # (n_pad, 2)

    num_tiles = n_pad // tile_n

    # Explicit scoped-VMEM budget: double-buffered logits + lane-padded aux + headroom.
    logits_vmem = 2 * tile_n * c * itemsize
    aux_vmem = 2 * tile_n * 128 * 4            # (tile_n, 2) block lane-pads to 128
    vmem_limit = int(min(48 << 20, max(16 << 20, logits_vmem + aux_vmem + (4 << 20))))

    num_out, den_out = pl.pallas_call(
        _cross_entropy_kernel,
        out_shape=(
            jax.ShapeDtypeStruct((num_tiles, 8, 128), jnp.float32),
            jax.ShapeDtypeStruct((num_tiles, 8, 128), jnp.float32),
        ),
        grid=(num_tiles,),
        in_specs=[
            pl.BlockSpec((tile_n, c), lambda i: (i, 0)),
            pl.BlockSpec((tile_n, 2), lambda i: (i, 0)),
        ],
        out_specs=(
            pl.BlockSpec((1, 8, 128), lambda i: (i, 0, 0)),
            pl.BlockSpec((1, 8, 128), lambda i: (i, 0, 0)),
        ),
        compiler_params=pltpu.CompilerParams(
            dimension_semantics=("parallel",),   # independent per-tile partials (v7x: 2 TCs)
            vmem_limit_bytes=vmem_limit,
        ),
    )(logits, aux)

    num = jnp.sum(num_out[:, 0, 0])
    den = jnp.sum(den_out[:, 0, 0])
    return num / den


def make_per_cls_weights(cls_num_list, reweight_CE=True):
    """Deterministic replication of the module __init__ weight construction."""
    if not reweight_CE or cls_num_list is None:
        return None
    beta = 0.9999  # betas[idx] with idx = 1
    effective_num = 1.0 - np.power(beta, cls_num_list)
    per_cls_weights = (1.0 - beta) / np.array(effective_num)
    per_cls_weights = per_cls_weights / np.sum(per_cls_weights) * len(cls_num_list)
    return jnp.asarray(per_cls_weights, jnp.float32)


def _reference_loss(logits, target, weight):
    """Pure-JAX reference of F.cross_entropy(logits, target, weight=weight)."""
    logp = jax.nn.log_softmax(jnp.asarray(logits, jnp.float32), axis=-1)
    nll = -jnp.take_along_axis(logp, target[:, None].astype(jnp.int32), axis=-1)[:, 0]
    w_t = weight[target.astype(jnp.int32)]
    return jnp.sum(w_t * nll) / jnp.sum(w_t)


if __name__ == "__main__":
    key = jax.random.PRNGKey(0)
    k1, k2, k3, k4 = jax.random.split(key, 4)

    # Case 1: small (N=64, C=16), force the Pallas path; weighted and unweighted, f32 logits.
    N, C = 64, 16
    logits = jax.random.normal(k1, (N, C), dtype=jnp.float32)
    target = jax.random.randint(k2, (N,), 0, C, dtype=jnp.int32)

    cls_num_list = list(range(100, 100 + C))  # synthetic class counts for the reweighted path
    per_cls_weights = make_per_cls_weights(cls_num_list, reweight_CE=True)

    loss_w = cross_entropy_loss(logits, target, per_cls_weights, force_pallas=True)
    loss_u = cross_entropy_loss(logits, target, None, force_pallas=True)
    jax.block_until_ready((loss_w, loss_u))

    ref_w = _reference_loss(logits, target, per_cls_weights)
    ref_u = _reference_loss(logits, target, jnp.ones((C,), jnp.float32))
    assert jnp.allclose(loss_w, ref_w, atol=1e-5, rtol=1e-5)
    assert jnp.allclose(loss_u, ref_u, atol=1e-5, rtol=1e-5)

    # Case 2: N not divisible by the tile -> padding + multi-tile parallel partials.
    N2, C2 = 37, 6
    logits2 = jax.random.normal(k3, (N2, C2), dtype=jnp.float32)
    target2 = jax.random.randint(k4, (N2,), 0, C2, dtype=jnp.int32)
    loss2 = cross_entropy_loss(logits2, target2, None, tile_n=8, force_pallas=True)
    jax.block_until_ready(loss2)
    ref2 = _reference_loss(logits2, target2, jnp.ones((C2,), jnp.float32))
    assert jnp.allclose(loss2, ref2, atol=1e-5, rtol=1e-5)

    # Case 3: bf16 logits through the Pallas path (math stays f32 inside the kernel).
    loss_bf16 = cross_entropy_loss(logits.astype(jnp.bfloat16), target, per_cls_weights,
                                   force_pallas=True)
    jax.block_until_ready(loss_bf16)
    assert jnp.allclose(loss_bf16, ref_w, atol=3e-2, rtol=3e-2)

    # Case 4: default small-problem fast path (pure XLA, no pallas_call).
    loss_fast = cross_entropy_loss(logits, target, per_cls_weights)
    jax.block_until_ready(loss_fast)
    assert jnp.allclose(loss_fast, ref_w, atol=1e-5, rtol=1e-5)

    print("KERNEL_OK")
</pallas_src>

<mosaic_0001>
module attributes {stable_mosaic.version = 11 : i64} {
  func.func @_cross_entropy_kernel(%arg0: i32, %arg1: memref<64x16xf32, #tpu.memory_space<vmem>>, %arg2: memref<64x2xf32, #tpu.memory_space<vmem>>, %arg3: memref<1x8x128xf32, #tpu.memory_space<vmem>>, %arg4: memref<1x8x128xf32, #tpu.memory_space<vmem>>) attributes {dimension_semantics = [#tpu.dimension_semantics<parallel>], iteration_bounds = array<i64: 1>, scalar_prefetch = 0 : i64, scratch_operands = 0 : i64, tpu.core_type = #tpu.core_type<tc>, window_params = [{transform_indices = @transform_0, window_bounds = array<i64: 64, 16>}, {transform_indices = @transform_1, window_bounds = array<i64: 64, 2>}, {transform_indices = @transform_2, window_bounds = array<i64: 1, 8, 128>}, {transform_indices = @transform_3, window_bounds = array<i64: 1, 8, 128>}]} {
    %c0 = arith.constant 0 : index
    %c0_0 = arith.constant 0 : index
    %0 = vector.load %arg1[%c0, %c0_0] : memref<64x16xf32, #tpu.memory_space<vmem>>, vector<64x16xf32>
    %c0_1 = arith.constant 0 : index
    %c0_2 = arith.constant 0 : index
    %1 = vector.load %arg2[%c0_1, %c0_2] : memref<64x2xf32, #tpu.memory_space<vmem>>, vector<64x2xf32>
    %2 = vector.extract_strided_slice %1 {offsets = [0, 0], sizes = [64, 1], strides = [1, 1]} : vector<64x2xf32> to vector<64x1xf32>
    %3 = arith.fptosi %2 : vector<64x1xf32> to vector<64x1xi32>
    %4 = vector.extract_strided_slice %1 {offsets = [0, 1], sizes = [64, 1], strides = [1, 1]} : vector<64x2xf32> to vector<64x1xf32>
    %5 = tpu.iota {dimensions = array<i32: 1>} : vector<1x16xi32>
    %6 = vector.broadcast %5 : vector<1x16xi32> to vector<64x16xi32>
    %7 = vector.broadcast %3 : vector<64x1xi32> to vector<64x16xi32>
    %8 = arith.cmpi eq, %6, %7 : vector<64x16xi32>
    %cst = arith.constant dense<0xFF800000> : vector<64xf32>
    %9 = vector.multi_reduction <maximumf>, %0, %cst [1] : vector<64x16xf32> to vector<64xf32>
    %10 = vector.shape_cast %9 : vector<64xf32> to vector<64x1xf32>
    %11 = vector.broadcast %10 : vector<64x1xf32> to vector<64x16xf32>
    %12 = arith.subf %0, %11 : vector<64x16xf32>
    %13 = math.exp %12 : vector<64x16xf32>
    %cst_3 = arith.constant dense<0.000000e+00> : vector<64xf32>
    %14 = vector.multi_reduction <add>, %13, %cst_3 [1] : vector<64x16xf32> to vector<64xf32>
    %15 = vector.shape_cast %14 : vector<64xf32> to vector<64x1xf32>
    %cst_4 = arith.constant 0.000000e+00 : f32
    %16 = vector.broadcast %cst_4 : f32 to vector<64x16xf32>
    %17 = arith.select %8, %12, %16 : vector<64x16xi1>, vector<64x16xf32>
    %cst_5 = arith.constant dense<0.000000e+00> : vector<64xf32>
    %18 = vector.multi_reduction <add>, %17, %cst_5 [1] : vector<64x16xf32> to vector<64xf32>
    %19 = vector.shape_cast %18 : vector<64xf32> to vector<64x1xf32>
    %20 = math.log %15 : vector<64x1xf32>
    %21 = arith.subf %20, %19 : vector<64x1xf32>
    %22 = arith.mulf %4, %21 : vector<64x1xf32>
    %cst_6 = arith.constant dense<0.000000e+00> : vector<1xf32>
    %23 = vector.multi_reduction <add>, %22, %cst_6 [0] : vector<64x1xf32> to vector<1xf32>
    %24 = vector.shape_cast %23 : vector<1xf32> to vector<1x1xf32>
    %cst_7 = arith.constant dense<0.000000e+00> : vector<1xf32>
    %25 = vector.multi_reduction <add>, %4, %cst_7 [0] : vector<64x1xf32> to vector<1xf32>
    %26 = vector.shape_cast %25 : vector<1xf32> to vector<1x1xf32>
    %27 = vector.shape_cast %24 : vector<1x1xf32> to vector<1x1x1xf32>
    %28 = vector.shape_cast %27 : vector<1x1x1xf32> to vector<1x1x1xf32>
    %29 = vector.broadcast %28 : vector<1x1x1xf32> to vector<1x8x128xf32>
    %c0_8 = arith.constant 0 : index
    %c0_9 = arith.constant 0 : index
    %c0_10 = arith.constant 0 : index
    %30 = vector.load %arg3[%c0_8, %c0_9, %c0_10] : memref<1x8x128xf32, #tpu.memory_space<vmem>>, vector<1x8x128xf32>
    tpu.vector_store %arg3[%c0_8, %c0_9, %c0_10], %29 {strides = array<i32>} : memref<1x8x128xf32, #tpu.memory_space<vmem>>, vector<1x8x128xf32>,
    %31 = vector.shape_cast %26 : vector<1x1xf32> to vector<1x1x1xf32>
    %32 = vector.shape_cast %31 : vector<1x1x1xf32> to vector<1x1x1xf32>
    %33 = vector.broadcast %32 : vector<1x1x1xf32> to vector<1x8x128xf32>
    %c0_11 = arith.constant 0 : index
    %c0_12 = arith.constant 0 : index
    %c0_13 = arith.constant 0 : index
    %34 = vector.load %arg4[%c0_11, %c0_12, %c0_13] : memref<1x8x128xf32, #tpu.memory_space<vmem>>, vector<1x8x128xf32>
    tpu.vector_store %arg4[%c0_11, %c0_12, %c0_13], %33 {strides = array<i32>} : memref<1x8x128xf32, #tpu.memory_space<vmem>>, vector<1x8x128xf32>,
    return
  }
  func.func @transform_0(%arg0: i32) -> (i32, i32) {
    %c0_i32 = arith.constant 0 : i32
    %c0_i32_0 = arith.constant 0 : i32
    return %arg0, %c0_i32 : i32, i32
  }
  func.func @transform_1(%arg0: i32) -> (i32, i32) {
    %c0_i32 = arith.constant 0 : i32
    %c0_i32_0 = arith.constant 0 : i32
    return %arg0, %c0_i32 : i32, i32
  }
  func.func @transform_2(%arg0: i32) -> (i32, i32, i32) {
    %c0_i32 = arith.constant 0 : i32
    %c0_i32_0 = arith.constant 0 : i32
    %c0_i32_1 = arith.constant 0 : i32
    return %arg0, %c0_i32, %c0_i32_0 : i32, i32, i32
  }
  func.func @transform_3(%arg0: i32) -> (i32, i32, i32) {
    %c0_i32 = arith.constant 0 : i32
    %c0_i32_0 = arith.constant 0 : i32
    %c0_i32_1 = arith.constant 0 : i32
    return %arg0, %c0_i32, %c0_i32_0 : i32, i32, i32
  }
}

</mosaic_0001>

<bundles_post_ra>
// kernel: tpu_custom_call.1
= control target key start
LH: loop header
LB: loop body
LE: loop exit
PB: predicated region body
PF: predicated region fallthrough
CT: control target
= control target key end

     0   :  { %9 = vsyncpa [#allocation3], 0  ;;  %vm73_vm0 = vcmask 130048   ;;  %v430_v6 = vmov 0   ;;  %s654_s0 = inlined_call_operand.vmem [shape: f32[64,16], index: 0, kind: input, shape index: {}]   ;;  %s655_s1 = inlined_call_operand.vmem [shape: f32[64,2], index: 1, kind: input, shape index: {}]   ;;  %s656_s2 = inlined_call_operand.hbm [shape: f32[1,8,128], index: 2, kind: output, shape index: {0}]   ;;  %s657_s3 = inlined_call_operand.hbm [shape: f32[1,8,128], index: 3, kind: output, shape index: {1}]  }
   0x1   :  { %v457_v0 = vld [vmem:[%s654_s0 + $0x20] sm:$0xff]  ;;  %v462_v1 = vld [vmem:[%s654_s0 + $0x10] sm:$0xff]  ;;  %341 = vset.pattern.permute.xlu2 %v430_v6  ;;  %342 = vset.pattern.permute.xlu0 %v430_v6 }
   0x2   :  { %v467_v2 = vld [vmem:[%s654_s0] sm:$0xff]  ;;  %v86_v3 = vsel %vm73_vm0, %v457_v0, -inf  ;;  %v80_v4 = vsel %vm73_vm0, %v462_v1, -inf  ;;  %343 = vset.pattern.permute.xlu1 %v430_v6 }
   0x3   :  { %v74_v5 = vsel %vm73_vm0, %v467_v2, -inf  ;;  %87 = vmax.xlane.f32.xlu2 %v86_v3  ;;  %81 = vmax.xlane.f32.xlu1 %v80_v4 }
   0x4   :  { %75 = vmax.xlane.f32.xlu0 %v74_v5 }
   0x5   :  { %10 = vsyncpa [#allocation5], 0  ;;  %v478_v7 = vld [vmem:[%s654_s0 + $0x28] sm:$0xff]  ;;  %v483_v8 = vld [vmem:[%s654_s0 + $0x18] sm:$0xff]  ;;  %v39_v4 = vlaneseq  ;;  %s283_s19 = sshll.u32 %s657_s3, 4  ;;  %s433_s20 = smov [#allocation2]   ;;  %s284_s19 = int_to_ptr.hbm [resolvable:$true] %s283_s19 }
   0x6   :  { %v488_v9 = vld [vmem:[%s654_s0 + $0x8] sm:$0xff]  ;;  %v89_v10 = vsel %vm73_vm0, %v478_v7, -inf  ;;  %v83_v11 = vsel %vm73_vm0, %v483_v8, -inf  ;;  %v499_v13 = vld [vmem:[%s654_s0 + $0x38] sm:$0xff]  ;;  %v504_v14 = vld [vmem:[%s654_s0 + $0x30] sm:$0xff]  ;;  %s270_s21 = sshll.u32 %s433_s20, 4  ;;  %s271_s21 = int_to_ptr.vmem [resolvable:$true] %s270_s21 }
   0x7   :  { %v77_v12 = vsel %vm73_vm0, %v488_v9, -inf  ;;  %v95_v15 = vsel %vm73_vm0, %v499_v13, -inf  ;;  %v92_v16 = vsel %vm73_vm0, %v504_v14, -inf  ;;  %v513_v17 = vld [vmem:[%s655_s1] sm:$0xff]  ;;  %v521_v20 = vld [vmem:[%s655_s1 + $0x8] sm:$0xff]  ;;  %v528_v24 = vld [vmem:[%s655_s1 + $0x18] sm:$0xff] }
   0x8   :  { %v298_v18 = vceil.f32 %v513_v17  ;;  %v299_v19 = vfloor.f32 %v513_v17  ;;  %vm297_vm1 = vcmp.lt.s32.totalorder %v513_v17, 0  ;;  %v303_v22 = vceil.f32 %v521_v20  ;;  %v534_v25 = vld [vmem:[%s655_s1 + $0x10] sm:$0xff]  ;;  %v545_v35 = vld [vmem:[%s655_s1 + $0x20] sm:$0xff]  ;;  %v550_v36 = vld [vmem:[%s655_s1 + $0x28] sm:$0xff]  ;;  %s272_s24 = sshll.u32 %s656_s2, 4  ;;  %s273_s24 = int_to_ptr.hbm [resolvable:$true] %s272_s24 }
   0x9   :  { %v304_v23 = vfloor.f32 %v521_v20  ;;  %vm302_vm2 = vcmp.lt.s32.totalorder %v521_v20, 0  ;;  %v313_v27 = vceil.f32 %v528_v24  ;;  %v314_v28 = vfloor.f32 %v528_v24  ;;  %v561_v45 = vld [vmem:[%s655_s1 + $0x30] sm:$0xff]  ;;  %v566_v46 = vld [vmem:[%s655_s1 + $0x38] sm:$0xff]  ;;  %s432_s1 = smov [#allocation4]  }
   0xa   :  { %v300_v21 = vsel %vm297_vm1, %v298_v18, %v299_v19  ;;  %vm312_vm3 = vcmp.lt.s32.totalorder %v528_v24, 0  ;;  %v308_v30 = vceil.f32 %v534_v25  ;;  %v309_v31 = vfloor.f32 %v534_v25  ;;  %s281_s16 = sshll.u32 %s432_s1, 4  ;;  %s282_s16 = int_to_ptr.vmem [resolvable:$true] %s281_s16 }
   0xb   :  { %90 = vmax.xlane.f32.xlu2 %v89_v10  ;;  %84 = vmax.xlane.f32.xlu1 %v83_v11  ;;  %v301_v26 = vcvt.f32.s32 %v300_v21  ;;  %v305_v29 = vsel %vm302_vm2, %v303_v22, %v304_v23  ;;  %vm307_vm4 = vcmp.lt.s32.totalorder %v534_v25, 0  ;;  %v315_v33 = vsel %vm312_vm3, %v313_v27, %v314_v28 }
   0xc   :  { %78 = vmax.xlane.f32.xlu0 %v77_v12  ;;  %v306_v32 = vcvt.f32.s32 %v305_v29  ;;  %v310_v34 = vsel %vm307_vm4, %v308_v30, %v309_v31  ;;  %v316_v37 = vcvt.f32.s32 %v315_v33  ;;  %v318_v39 = vceil.f32 %v545_v35 }
   0xd   :  { %v311_v38 = vcvt.f32.s32 %v310_v34  ;;  %v319_v40 = vfloor.f32 %v545_v35  ;;  %vm317_vm5 = vcmp.lt.s32.totalorder %v545_v35, 0  ;;  %v323_v41 = vceil.f32 %v550_v36 }
   0xe   :  { %v324_v42 = vfloor.f32 %v550_v36  ;;  %vm322_vm6 = vcmp.lt.s32.totalorder %v550_v36, 0  ;;  %v328_v49 = vceil.f32 %v561_v45  ;;  %v329_v50 = vfloor.f32 %v561_v45 }
   0xf   :  { %v320_v43 = vsel %vm317_vm5, %v318_v39, %v319_v40  ;;  %vm327_vm7 = vcmp.lt.s32.totalorder %v561_v45, 0  ;;  %v333_v51 = vceil.f32 %v566_v46  ;;  %v334_v52 = vfloor.f32 %v566_v46 }
  0x10   :  { %v325_v44 = vsel %vm322_vm6, %v323_v41, %v324_v42  ;;  %v321_v47 = vcvt.f32.s32 %v320_v43  ;;  %vm332_vm8 = vcmp.lt.s32.totalorder %v566_v46, 0  ;;  %v330_v53 = vsel %vm327_vm7, %v328_v49, %v329_v50 }
  0x11   :  { %v326_v48 = vcvt.f32.s32 %v325_v44  ;;  %v335_v54 = vsel %vm332_vm8, %v333_v51, %v334_v52  ;;  %v331_v55 = vcvt.f32.s32 %v330_v53  ;;  %vm210_vm2 = vcmask 15368  }
  0x12   :  { %v336_v56 = vcvt.f32.s32 %v335_v54 }
  0x13   :  { %96 = vmax.xlane.f32.xlu1 %v95_v15 }
  0x14   :  { %93 = vmax.xlane.f32.xlu0 %v92_v16 }
  0x23   :  { %42 = vperm.xlu2 %341, %v301_v26  }
  0x28   :  { %45 = vperm.xlu0 %342, %v306_v32  }
  0x2b   :  { %51 = vperm.xlu2 %341, %v316_v37  }
  0x2c   :  { %48 = vperm.xlu1 %343, %v311_v38  }
  0x33   :  { %54 = vperm.xlu2 %341, %v321_v47  }
  0x34   :  { %57 = vperm.xlu1 %343, %v326_v48  }
  0x3b   :  { %60 = vperm.xlu2 %341, %v331_v55  }
  0x3c   :  { %63 = vperm.xlu1 %343, %v336_v56  }
  0x76   :  { %v88_v57 = vpop.xlane.xlu2 %87  ;;  %v82_v58 = vpop.xlane.xlu1 %81 }
  0x77   :  { %v575_v59 = vsub.f32 %v462_v1, %v82_v58  ;;  %v76_v60 = vpop.xlane.xlu0 %75  ;;  %v584_v1 = vand.u32 127, %v39_v4  ;;  %v102_v41 = vsub.f32 %v457_v0, %v88_v57 }
  0x78   :  { %v98_v16 = vsub.f32 %v467_v2, %v76_v60 }
  0x79   :  { %v110_v61 = vmul.f32 1.442695, %v575_v59  ;;  %v114_v48 = vmul.f32 1.442695, %v102_v41 }
  0x7a   :  { %v106_v37 = vmul.f32 1.442695, %v98_v16 }
  0x7b   :  { %346 = vpow2.f32 %v110_v61 }
  0x7e   :  { %v91_v62 = vpop.xlane.xlu2 %90  ;;  %v85_v12 = vpop.xlane.xlu1 %84 }
  0x7f   :  { %v579_v63 = vsub.f32 %v478_v7, %v91_v62  ;;  %v79_v3 = vpop.xlane.xlu0 %78  ;;  %v101_v7 = vsub.f32 %v483_v8, %v85_v12 }
  0x80   :  { %v99_v5 = vsub.f32 %v488_v9, %v79_v3 }
  0x81   :  { %v116_v6 = vmul.f32 1.442695, %v579_v63  ;;  %v347_v10 = vpop.eup %346  ;;  %v112_v28 = vmul.f32 1.442695, %v101_v7 }
  0x82   :  { %v128_v11 = vsel %vm73_vm0, %v347_v10, 0.0  ;;  %v108_v15 = vmul.f32 1.442695, %v99_v5 }
  0x83   :  { %348 = vpow2.f32 %v116_v6  ;;  %129 = vadd.xlane.f32.xlu1 %v128_v11 }
  0x84   :  { %350 = vpow2.f32 %v108_v15  ;;  %v232_v15 = vsel %vm210_vm2, %v513_v17, 0.0 }
  0x86   :  { %v43_v18 = vpop.permute.xlu2 %42  ;;  %v97_v32 = vpop.xlane.xlu1 %96 }
  0x87   :  { %vm65_vm9 = vcmp.eq.s32.totalorder %v584_v1, %v43_v18  ;;  %v94_v19 = vpop.xlane.xlu0 %93  ;;  %v105_v53 = vsub.f32 %v499_v13, %v97_v32 }
  0x88   :  { %v104_v9 = vsub.f32 %v504_v14, %v94_v19  ;;  %v146_v21 = vsel %vm65_vm9, %v98_v16, 0.0  ;;  %v233_v16 = vsel %vm210_vm2, %v521_v20, 0.0 }
  0x89   :  { %v349_v22 = vpop.eup %348  ;;  %v154_v23 = vsel %vm73_vm0, %v146_v21, 0.0  ;;  %v120_v57 = vmul.f32 1.442695, %v105_v53  ;;  %v234_v18 = vadd.f32 %v233_v16, %v232_v15 }
  0x8a   :  { %v118_v26 = vmul.f32 1.442695, %v104_v9  ;;  %155 = vadd.xlane.f32.xlu2 %v154_v23  ;;  %v137_v27 = vsel %vm73_vm0, %v349_v22, 0.0  ;;  %v351_v2 = vpop.eup %350  ;;  %v239_v23 = vsel %vm210_vm2, %v545_v35, 0.0 }
  0x8b   :  { %138 = vadd.xlane.f32.xlu1 %v137_v27  ;;  %v125_v29 = vsel %vm73_vm0, %v351_v2, 0.0  ;;  %v241_v27 = vsel %vm210_vm2, %v550_v36, 0.0 }
  0x8c   :  { %352 = vpow2.f32 %v118_v26 }
  0x8d   :  { %354 = vpow2.f32 %v112_v28 }
  0x8e   :  { %v52_v8 = vpop.permute.xlu2 %51  ;;  %356 = vpow2.f32 %v106_v37 }
  0x8f   :  { %vm68_vm10 = vcmp.eq.s32.totalorder %v584_v1, %v52_v8  ;;  %358 = vpow2.f32 %v114_v48 }
  0x90   :  { %v149_v38 = vsel %vm68_vm10, %v101_v7, 0.0  ;;  %360 = vpow2.f32 %v120_v57  ;;  %v235_v7 = vsel %vm210_vm2, %v534_v25, 0.0 }
  0x91   :  { %v163_v40 = vsel %vm73_vm0, %v149_v38, 0.0 }
  0x92   :  { %v353_v30 = vpop.eup %352  ;;  %126 = vadd.xlane.f32.xlu2 %v125_v29  ;;  %v243_v29 = vsel %vm210_vm2, %v561_v45, 0.0 }
  0x93   :  { %v140_v14 = vsel %vm73_vm0, %v353_v30, 0.0  ;;  %v355_v31 = vpop.eup %354 }
  0x94   :  { %141 = vadd.xlane.f32.xlu1 %v140_v14  ;;  %v131_v34 = vsel %vm73_vm0, %v355_v31, 0.0  ;;  %v357_v52 = vpop.eup %356  ;;  %v245_v14 = vsel %vm210_vm2, %v566_v46, 0.0  ;;  %v431_v31 = vmov 1  }
  0x95   :  { %v122_v54 = vsel %vm73_vm0, %v357_v52, 0.0  ;;  %345 = vset.pattern.permute.xlu1 %v431_v31  ;;  %344 = vset.pattern.permute.xlu0 %v431_v31 }
  0x96   :  { %v55_v33 = vpop.permute.xlu2 %54 }
  0x97   :  { %vm69_vm14 = vcmp.eq.s32.totalorder %v584_v1, %v55_v33 }
  0x98   :  { %v150_v56 = vsel %vm69_vm14, %v102_v41, 0.0 }
  0x99   :  { %v166_v58 = vsel %vm73_vm0, %v150_v56, 0.0 }
  0x9a   :  { %v46_v39 = vpop.permute.xlu0 %45  ;;  %132 = vadd.xlane.f32.xlu2 %v131_v34 }
  0x9b   :  { %vm66_vm11 = vcmp.eq.s32.totalorder %v584_v1, %v46_v39 }
  0x9c   :  { %164 = vadd.xlane.f32.xlu1 %v163_v40  ;;  %v147_v42 = vsel %vm66_vm11, %v99_v5, 0.0 }
  0x9d   :  { %v157_v43 = vsel %vm73_vm0, %v147_v42, 0.0 }
  0x9e   :  { %158 = vadd.xlane.f32.xlu0 %v157_v43  ;;  %v61_v44 = vpop.permute.xlu2 %60  ;;  %v49_v47 = vpop.permute.xlu1 %48 }
  0x9f   :  { %vm71_vm12 = vcmp.eq.s32.totalorder %v584_v1, %v61_v44  ;;  %vm67_vm13 = vcmp.eq.s32.totalorder %v584_v1, %v49_v47 }
  0xa0   :  { %v148_v49 = vsel %vm67_vm13, %v575_v59, 0.0  ;;  %v152_v50 = vsel %vm71_vm12, %v104_v9, 0.0  ;;  %v359_v59 = vpop.eup %358  ;;  %v237_v9 = vsel %vm210_vm2, %v528_v24, 0.0 }
  0xa1   :  { %v160_v51 = vsel %vm73_vm0, %v148_v49, 0.0  ;;  %v172_v0 = vsel %vm73_vm0, %v152_v50, 0.0  ;;  %v134_v60 = vsel %vm73_vm0, %v359_v59, 0.0  ;;  %v361_v3 = vpop.eup %360 }
  0xa2   :  { %161 = vadd.xlane.f32.xlu2 %v160_v51  ;;  %v143_v4 = vsel %vm73_vm0, %v361_v3, 0.0 }
  0xa4   :  { %173 = vadd.xlane.f32.xlu1 %v172_v0 }
  0xa6   :  { %123 = vadd.xlane.f32.xlu0 %v122_v54  ;;  %v58_v55 = vpop.permute.xlu1 %57 }
  0xa7   :  { %vm70_vm1 = vcmp.eq.s32.totalorder %v584_v1, %v58_v55 }
  0xa8   :  { %v151_v5 = vsel %vm70_vm1, %v579_v63, 0.0  ;;  %v236_v63 = vadd.f32 %v235_v7, %v234_v18 }
  0xa9   :  { %v169_v6 = vsel %vm73_vm0, %v151_v5, 0.0 }
  0xaa   :  { %167 = vadd.xlane.f32.xlu2 %v166_v58  ;;  %v238_v22 = vadd.f32 %v237_v9, %v236_v63 }
  0xac   :  { %v240_v26 = vadd.f32 %v239_v23, %v238_v22 }
  0xae   :  { %135 = vadd.xlane.f32.xlu0 %v134_v60  ;;  %v64_v61 = vpop.permute.xlu1 %63  ;;  %v242_v28 = vadd.f32 %v241_v27, %v240_v26 }
  0xaf   :  { %vm72_vm15 = vcmp.eq.s32.totalorder %v584_v1, %v64_v61 }
  0xb0   :  { %v153_v62 = vsel %vm72_vm15, %v105_v53, 0.0  ;;  %v244_v30 = vadd.f32 %v243_v29, %v242_v28 }
  0xb1   :  { %v175_v13 = vsel %vm73_vm0, %v153_v62, 0.0 }
  0xb2   :  { %176 = vadd.xlane.f32.xlu2 %v175_v13  ;;  %v246_v32 = vadd.f32 %v245_v14, %v244_v30 }
  0xb4   :  { %v247_v37 = vrot.slane %v246_v32, 4 }
  0xb6   :  { %144 = vadd.xlane.f32.xlu0 %v143_v4  ;;  %v248_v40 = vadd.f32 %v247_v37, %v246_v32 }
  0xb8   :  { %v249_v47 = vrot.slane %v248_v40, 2 }
  0xba   :  { %v250_v0 = vadd.f32 %v249_v47, %v248_v40 }
  0xbc   :  { %v251_v56 = vrot.slane %v250_v0, 1 }
  0xbe   :  { %170 = vadd.xlane.f32.xlu0 %v169_v6  ;;  %v252_v60 = vadd.f32 %v251_v56, %v250_v0 }
  0xc0   :  { %261 = vperm.xlu1 %345, %v252_v60  }
  0xf6   :  { %v130_v11 = vpop.xlane.xlu1 %129 }
  0xfd   :  { %v156_v10 = vpop.xlane.xlu2 %155 }
  0xfe   :  { %v139_v1 = vpop.xlane.xlu1 %138 }
 0x105   :  { %v127_v12 = vpop.xlane.xlu2 %126 }
 0x106   :  { %362 = vlog2.f32 %v127_v12 }
 0x107   :  { %v142_v2 = vpop.xlane.xlu1 %141 }
 0x10c   :  { %v363_v33 = vpop.eup %362 }
 0x10d   :  { %v133_v21 = vpop.xlane.xlu2 %132  ;;  %v181_v39 = vmul.f32 0.6931472, %v363_v33 }
 0x10f   :  { %v165_v49 = vpop.xlane.xlu1 %164 }
 0x111   :  { %v159_v19 = vpop.xlane.xlu0 %158 }
 0x112   :  { %v195_v44 = vsub.f32 %v181_v39, %v159_v19 }
 0x114   :  { %v203_v54 = vmul.f32 %v195_v44, %v521_v20 }
 0x115   :  { %v162_v34 = vpop.xlane.xlu2 %161 }
 0x116   :  { %v212_v3 = vsel %vm210_vm2, %v203_v54, 0.0 }
 0x119   :  { %v124_v8 = vpop.xlane.xlu0 %123 }
 0x11a   :  { %364 = vlog2.f32 %v124_v8 }
 0x11b   :  { %366 = vlog2.f32 %v130_v11 }
 0x11c   :  { %368 = vlog2.f32 %v133_v21 }
 0x11d   :  { %v168_v59 = vpop.xlane.xlu2 %167 }
 0x120   :  { %v365_v38 = vpop.eup %364 }
 0x121   :  { %v367_v41 = vpop.eup %366  ;;  %v179_v42 = vmul.f32 0.6931472, %v365_v38  ;;  %v136_v43 = vpop.xlane.xlu0 %135 }
 0x122   :  { %370 = vlog2.f32 %v136_v43  ;;  %v369_v48 = vpop.eup %368  ;;  %v183_v51 = vmul.f32 0.6931472, %v367_v41 }
 0x123   :  { %v194_v50 = vsub.f32 %v179_v42, %v156_v10  ;;  %372 = vlog2.f32 %v142_v2  ;;  %v185_v53 = vmul.f32 0.6931472, %v369_v48  ;;  %v174_v10 = vpop.xlane.xlu1 %173 }
 0x124   :  { %v196_v55 = vsub.f32 %v183_v51, %v162_v34  ;;  %374 = vlog2.f32 %v139_v1 }
 0x125   :  { %v202_v52 = vmul.f32 %v194_v50, %v513_v17  ;;  %v197_v13 = vsub.f32 %v185_v53, %v165_v49  ;;  %v177_v22 = vpop.xlane.xlu2 %176 }
 0x126   :  { %v204_v4 = vmul.f32 %v196_v55, %v534_v25 }
 0x127   :  { %v211_v58 = vsel %vm210_vm2, %v202_v52, 0.0  ;;  %v205_v12 = vmul.f32 %v197_v13, %v528_v24 }
 0x128   :  { %v371_v57 = vpop.eup %370  ;;  %v213_v5 = vadd.f32 %v212_v3, %v211_v58  ;;  %v214_v15 = vsel %vm210_vm2, %v204_v4, 0.0 }
 0x129   :  { %v187_v61 = vmul.f32 0.6931472, %v371_v57  ;;  %v145_v62 = vpop.xlane.xlu0 %144  ;;  %v373_v17 = vpop.eup %372  ;;  %v216_v9 = vsel %vm210_vm2, %v205_v12, 0.0 }
 0x12a   :  { %376 = vlog2.f32 %v145_v62  ;;  %v375_v6 = vpop.eup %374  ;;  %v191_v11 = vmul.f32 0.6931472, %v373_v17  ;;  %v215_v18 = vadd.f32 %v214_v15, %v213_v5 }
 0x12b   :  { %v198_v20 = vsub.f32 %v187_v61, %v168_v59  ;;  %v189_v1 = vmul.f32 0.6931472, %v375_v6 }
 0x12c   :  { %v200_v19 = vsub.f32 %v191_v11, %v174_v10  ;;  %v217_v27 = vadd.f32 %v216_v9, %v215_v18 }
 0x12d   :  { %v206_v16 = vmul.f32 %v198_v20, %v545_v35 }
 0x12e   :  { %v208_v24 = vmul.f32 %v200_v19, %v561_v45 }
 0x12f   :  { %v218_v21 = vsel %vm210_vm2, %v206_v16, 0.0 }
 0x130   :  { %v377_v7 = vpop.eup %376  ;;  %v219_v2 = vadd.f32 %v218_v21, %v217_v27  ;;  %v222_v30 = vsel %vm210_vm2, %v208_v24, 0.0 }
 0x131   :  { %v193_v63 = vmul.f32 0.6931472, %v377_v7  ;;  %v171_v25 = vpop.xlane.xlu0 %170 }
 0x132   :  { %v199_v23 = vsub.f32 %v189_v1, %v171_v25 }
 0x133   :  { %v201_v26 = vsub.f32 %v193_v63, %v177_v22 }
 0x134   :  { %v207_v28 = vmul.f32 %v199_v23, %v550_v36  ;;  %v262_v36 = vpop.permute.xlu1 %261 }
 0x135   :  { %v209_v35 = vmul.f32 %v201_v26, %v566_v46  ;;  %264 = vst [vmem:[#allocation4] sm:$0xff] %v262_v36 }
 0x136   :  { %v220_v8 = vsel %vm210_vm2, %v207_v28, 0.0  ;;  %286 = dma.vmem_to_hbm [thread:$0]  %s282_s16, 128, %s284_s19, [#allocation5]  }
 0x137   :  { %v221_v29 = vadd.f32 %v220_v8, %v219_v2  ;;  %v224_v31 = vsel %vm210_vm2, %v209_v35, 0.0 }
 0x139   :  { %v223_v14 = vadd.f32 %v222_v30, %v221_v29 }
 0x13b   :  { %v225_v32 = vadd.f32 %v224_v31, %v223_v14 }
 0x13d   :  { %v226_v33 = vrot.slane %v225_v32, 4 }
 0x13f   :  { %v227_v34 = vadd.f32 %v226_v33, %v225_v32 }
 0x141   :  { %v228_v37 = vrot.slane %v227_v34, 2 }
 0x143   :  { %v229_v38 = vadd.f32 %v228_v37, %v227_v34 }
 0x145   :  { %v230_v39 = vrot.slane %v229_v38, 1 }
 0x147   :  { %v231_v45 = vadd.f32 %v230_v39, %v229_v38 }
 0x149   :  { %255 = vperm.xlu0 %344, %v231_v45  }
 0x1bb   :  { %v256_v46 = vpop.permute.xlu0 %255 }
 0x1bc   :  { %258 = vst [vmem:[#allocation2] sm:$0xff] %v256_v46 }
 0x1bd   :  { %275 = dma.vmem_to_hbm [thread:$0]  %s271_s21, 128, %s273_s24, [#allocation3]  }
 0x1be   :  { %426 = dma.done.wait [#allocation3], 128  }
 0x1bf   :  { %427 = vsyncadd [#allocation3], 4294967168 }
 0x1c0   :  { %428 = dma.done.wait [#allocation5], 128  }
 0x1c1   :  { %429 = vsyncadd [#allocation5], 4294967168 }
 0x1c2   :  { %295 = vsyncpa [#allocation3], 1 }
 0x1c3   :  { %296 = vsyncpa [#allocation5], 1 }

</bundles_post_ra>
